<compile_context>
chip_gen: v7x
topology: tpu7x:2x2x1
jax: 0.10.0
libtpu: 0.0.40
codegen_flags: <defaults>
</compile_context>

<pallas_src>
import jax
import jax.numpy as jnp
from jax.experimental import pallas as pl
from jax.experimental.pallas import tpu as pltpu


def classic_rnn_kernel(x_ref,      # (T, B)   f32  time-major scalar input (read ONCE)
                       wih0_ref,   # (1, H)   f32  = W_ih_l0.T
                       b0_ref,     # (1, H)   f32  = b_ih_l0 + b_hh_l0
                       wf_ref,     # (H, 2H)  bf16 = concat([W_ih_l1.T, W_hh_l0.T], 1)
                       whh1_ref,   # (H, H)   bf16 = W_hh_l1.T
                       b1_ref,     # (1, H)   f32  = b_ih_l1 + b_hh_l1
                       woutT_ref,  # (1, H)   f32  = W.T (final projection, N == 1)
                       bout_ref,   # (1, 1)   f32  = b
                       y_ref):     # (B, 1)   f32  output
    T, B = x_ref.shape
    H = wih0_ref.shape[1]

    # ---- Hoisted layer-0 input contribution (+ folded bias), OFF the serial chain ----
    # Valid because input_size == 1: a0_all[t] = x[t] * Wih0.T + b0.
    a0_all = (x_ref[...][:, :, None] * wih0_ref[...][None, :, :]
              + b0_ref[...][None, :, :])                       # (T, B, H) f32

    wf = wf_ref[...]                                           # (H, 2H) bf16
    whh1 = whh1_ref[...]                                       # (H, H)  bf16
    b1 = b1_ref[...]                                           # (1, H)  f32

    # Carried recurrent terms (f32): r0(t) = h0(t-1)@Whh0.T, r1(t) = h1(t-1)@Whh1.T.
    r0 = jnp.zeros((B, H), jnp.float32)
    r1 = jnp.zeros((B, H), jnp.float32)
    h1 = jnp.zeros((B, H), jnp.float32)

    # ---- Recurrence, fully unrolled (T static & tiny).  Layer-0 chain carries only
    # ONE fused MXU dot + ONE tanh per step; the h1 tanh and r1 dot hang off it. ----
    for t in range(T):
        h0 = jnp.tanh(a0_all[t] + r0)                          # (B, H) f32
        # Single fused dot: [:, :H] = u1(t) = h0@Wih1.T, [:, H:] = r0(t+1) = h0@Whh0.T.
        fused = jnp.dot(h0.astype(jnp.bfloat16), wf,
                        preferred_element_type=jnp.float32)    # (B, 2H) f32
        # Layer 1 (dropout between layers is 0.0 -> identity).
        h1 = jnp.tanh(fused[:, :H] + b1 + r1)                  # (B, H) f32
        r0 = fused[:, H:]
        if t + 1 < T:                                          # r1(T) is never needed
            r1 = jnp.dot(h1.astype(jnp.bfloat16), whh1,
                         preferred_element_type=jnp.float32)   # (B, H) f32

    # ---- Final projection y = h1 @ W + b as an f32 lane reduction (W: (H, 1)) ----
    y_ref[...] = (jnp.sum(h1 * woutT_ref[...], axis=-1, keepdims=True)
                  + bout_ref[...])


def classic_rnn_forward(x, params):
    """x: (batch, seq) float32 -> y: (batch, 1) float32 (matches PyTorch forward)."""
    x = x.astype(jnp.float32)
    B, S = x.shape
    H = params["w_hh_l0"].shape[0]
    input_size = params["w_ih_l0"].shape[1]
    # The hoisted a0_all path (elementwise x * Wih0.T) requires input_size == 1,
    # exactly as the PyTorch forward (x.unsqueeze(-1)) implies.
    assert input_size == 1, "ClassicRNN forward requires input_size == 1"

    # Layout plumbing only: time-major (S, B); read exactly once in-kernel, outside the
    # recurrence.  No degenerate trailing dim -> whole input is one (8,128) VMEM tile.
    xt = jnp.transpose(x, (1, 0))                              # (S, B)

    wih0 = params["w_ih_l0"].T                                 # (1, H) f32 (VPU operand)
    b0 = (params["b_ih_l0"] + params["b_hh_l0"])[None, :]      # (1, H)
    b1 = (params["b_ih_l1"] + params["b_hh_l1"])[None, :]      # (1, H)

    # Fused weight: h0 @ [Wih1.T | Whh0.T] yields u1(t) and r0(t+1) in one MXU dot.
    # MXU operands in bf16 (f32 accumulate inside the kernel).
    wf = jnp.concatenate([params["w_ih_l1"].T, params["w_hh_l0"].T],
                         axis=1).astype(jnp.bfloat16)          # (H, 2H) bf16
    whh1 = params["w_hh_l1"].T.astype(jnp.bfloat16)            # (H, H)  bf16

    woutT = params["W"].T                                      # (1, H)
    bout = params["b"][None, :]                                # (1, 1)

    vmem = pl.BlockSpec(memory_space=pltpu.MemorySpace.VMEM)
    return pl.pallas_call(
        classic_rnn_kernel,
        out_shape=jax.ShapeDtypeStruct((B, 1), jnp.float32),
        in_specs=[vmem] * 8,
        out_specs=vmem,
    )(xt, wih0, b0, wf, whh1, b1, woutT, bout)


def classic_rnn_reference(x, params):
    """Pure-JAX f32 reference mirroring torch.nn.RNN(tanh) + mm semantics."""
    x = x.astype(jnp.float32)
    B, S = x.shape
    H = params["w_hh_l0"].shape[0]
    xt = jnp.transpose(x[:, :, None], (1, 0, 2))               # (S, B, 1)
    h0 = jnp.zeros((B, H), jnp.float32)
    h1 = jnp.zeros((B, H), jnp.float32)
    for t in range(S):
        x_t = xt[t]
        h0 = jnp.tanh(x_t @ params["w_ih_l0"].T + params["b_ih_l0"]
                      + h0 @ params["w_hh_l0"].T + params["b_hh_l0"])
        h1 = jnp.tanh(h0 @ params["w_ih_l1"].T + params["b_ih_l1"]
                      + h1 @ params["w_hh_l1"].T + params["b_hh_l1"])
    return h1 @ params["W"] + params["b"]


def init_params(key, input_size, hidden_size):
    """Deterministic synthetic params matching nn.RNN / nn.Parameter shapes."""
    ks = jax.random.split(key, 10)
    bound = 1.0 / jnp.sqrt(hidden_size)
    u = lambda k, shape: jax.random.uniform(k, shape, jnp.float32, -bound, bound)
    return {
        # layer 0
        "w_ih_l0": u(ks[0], (hidden_size, input_size)),
        "w_hh_l0": u(ks[1], (hidden_size, hidden_size)),
        "b_ih_l0": u(ks[2], (hidden_size,)),
        "b_hh_l0": u(ks[3], (hidden_size,)),
        # layer 1
        "w_ih_l1": u(ks[4], (hidden_size, hidden_size)),
        "w_hh_l1": u(ks[5], (hidden_size, hidden_size)),
        "b_ih_l1": u(ks[6], (hidden_size,)),
        "b_hh_l1": u(ks[7], (hidden_size,)),
        # final projection (torch.randn init)
        "W": jax.random.normal(ks[8], (hidden_size, input_size), jnp.float32),
        "b": jax.random.normal(ks[9], (input_size,), jnp.float32),
    }


if __name__ == "__main__":
    batch, seq = 2, 8
    input_size, hidden_size, num_layers = 1, 32, 2   # forward requires input_size == 1

    key = jax.random.PRNGKey(0)
    kx, kp = jax.random.split(key)
    x = jax.random.normal(kx, (batch, seq), jnp.float32)
    params = init_params(kp, input_size, hidden_size)

    y = classic_rnn_forward(x, params)
    y = jax.block_until_ready(y)

    y_ref = classic_rnn_reference(x, params)
    assert y.shape == (batch, input_size)
    # Tolerance tightened (was 1e-1): with bf16 MXU operands / f32 accumulate the
    # drift at H=32, T=8 is ~1e-3..1e-2; a real bug (wrong weight / missing step)
    # gives O(1) error and still trips this check.
    assert jnp.allclose(y, y_ref, atol=2e-2, rtol=2e-2), (y, y_ref)

    print("KERNEL_OK")
</pallas_src>

<mosaic_0001>
module attributes {stable_mosaic.version = 11 : i64} {
  func.func @classic_rnn_kernel(%arg0: memref<8x2xf32, #tpu.memory_space<vmem>>, %arg1: memref<1x32xf32, #tpu.memory_space<vmem>>, %arg2: memref<1x32xf32, #tpu.memory_space<vmem>>, %arg3: memref<32x64xbf16, #tpu.memory_space<vmem>>, %arg4: memref<32x32xbf16, #tpu.memory_space<vmem>>, %arg5: memref<1x32xf32, #tpu.memory_space<vmem>>, %arg6: memref<1x32xf32, #tpu.memory_space<vmem>>, %arg7: memref<1x1xf32, #tpu.memory_space<vmem>>, %arg8: memref<2x1xf32, #tpu.memory_space<vmem>>) attributes {dimension_semantics = [], scalar_prefetch = 0 : i64, scratch_operands = 0 : i64, tpu.core_type = #tpu.core_type<tc>} {
    %c0 = arith.constant 0 : index
    %c0_0 = arith.constant 0 : index
    %0 = vector.load %arg0[%c0, %c0_0] : memref<8x2xf32, #tpu.memory_space<vmem>>, vector<8x2xf32>
    %1 = vector.shape_cast %0 : vector<8x2xf32> to vector<8x2x1xf32>
    %c0_1 = arith.constant 0 : index
    %c0_2 = arith.constant 0 : index
    %2 = vector.load %arg1[%c0_1, %c0_2] : memref<1x32xf32, #tpu.memory_space<vmem>>, vector<1x32xf32>
    %3 = vector.shape_cast %2 : vector<1x32xf32> to vector<1x1x32xf32>
    %4 = vector.broadcast %1 : vector<8x2x1xf32> to vector<8x2x32xf32>
    %5 = vector.broadcast %3 : vector<1x1x32xf32> to vector<8x2x32xf32>
    %6 = arith.mulf %4, %5 : vector<8x2x32xf32>
    %c0_3 = arith.constant 0 : index
    %c0_4 = arith.constant 0 : index
    %7 = vector.load %arg2[%c0_3, %c0_4] : memref<1x32xf32, #tpu.memory_space<vmem>>, vector<1x32xf32>
    %8 = vector.shape_cast %7 : vector<1x32xf32> to vector<1x1x32xf32>
    %9 = vector.broadcast %8 : vector<1x1x32xf32> to vector<8x2x32xf32>
    %10 = arith.addf %6, %9 : vector<8x2x32xf32>
    %c0_5 = arith.constant 0 : index
    %c0_6 = arith.constant 0 : index
    %11 = vector.load %arg3[%c0_5, %c0_6] : memref<32x64xbf16, #tpu.memory_space<vmem>>, vector<32x64xbf16>
    %c0_7 = arith.constant 0 : index
    %c0_8 = arith.constant 0 : index
    %12 = vector.load %arg4[%c0_7, %c0_8] : memref<32x32xbf16, #tpu.memory_space<vmem>>, vector<32x32xbf16>
    %c0_9 = arith.constant 0 : index
    %c0_10 = arith.constant 0 : index
    %13 = vector.load %arg5[%c0_9, %c0_10] : memref<1x32xf32, #tpu.memory_space<vmem>>, vector<1x32xf32>
    %cst = arith.constant 0.000000e+00 : f32
    %14 = vector.broadcast %cst : f32 to vector<2x32xf32>
    %cst_11 = arith.constant 0.000000e+00 : f32
    %15 = vector.broadcast %cst_11 : f32 to vector<2x32xf32>
    %16 = vector.extract_strided_slice %10 {offsets = [0, 0, 0], sizes = [1, 2, 32], strides = [1, 1, 1]} : vector<8x2x32xf32> to vector<1x2x32xf32>
    %17 = vector.shape_cast %16 : vector<1x2x32xf32> to vector<2x32xf32>
    %18 = arith.addf %17, %14 : vector<2x32xf32>
    %19 = math.tanh %18 : vector<2x32xf32>
    %20 = arith.truncf %19 : vector<2x32xf32> to vector<2x32xbf16>
    %cst_12 = arith.constant dense<0.000000e+00> : vector<2x64xf32>
    %21 = tpu.matmul %20, %11, %cst_12 {dimension_numbers = #tpu.dot_dimension_numbers<[1], [0], [0], [1], [0, 0, 1, 1], [], []>} : vector<2x32xbf16>, vector<32x64xbf16>, vector<2x64xf32> -> vector<2x64xf32>
    %22 = vector.extract_strided_slice %21 {offsets = [0, 0], sizes = [2, 32], strides = [1, 1]} : vector<2x64xf32> to vector<2x32xf32>
    %23 = vector.broadcast %13 : vector<1x32xf32> to vector<2x32xf32>
    %24 = arith.addf %22, %23 : vector<2x32xf32>
    %25 = arith.addf %24, %15 : vector<2x32xf32>
    %26 = math.tanh %25 : vector<2x32xf32>
    %27 = vector.extract_strided_slice %21 {offsets = [0, 32], sizes = [2, 32], strides = [1, 1]} : vector<2x64xf32> to vector<2x32xf32>
    %28 = arith.truncf %26 : vector<2x32xf32> to vector<2x32xbf16>
    %cst_13 = arith.constant dense<0.000000e+00> : vector<2x32xf32>
    %29 = tpu.matmul %28, %12, %cst_13 {dimension_numbers = #tpu.dot_dimension_numbers<[1], [0], [0], [1], [0, 0, 1, 1], [], []>} : vector<2x32xbf16>, vector<32x32xbf16>, vector<2x32xf32> -> vector<2x32xf32>
    %30 = vector.extract_strided_slice %10 {offsets = [1, 0, 0], sizes = [1, 2, 32], strides = [1, 1, 1]} : vector<8x2x32xf32> to vector<1x2x32xf32>
    %31 = vector.shape_cast %30 : vector<1x2x32xf32> to vector<2x32xf32>
    %32 = arith.addf %31, %27 : vector<2x32xf32>
    %33 = math.tanh %32 : vector<2x32xf32>
    %34 = arith.truncf %33 : vector<2x32xf32> to vector<2x32xbf16>
    %cst_14 = arith.constant dense<0.000000e+00> : vector<2x64xf32>
    %35 = tpu.matmul %34, %11, %cst_14 {dimension_numbers = #tpu.dot_dimension_numbers<[1], [0], [0], [1], [0, 0, 1, 1], [], []>} : vector<2x32xbf16>, vector<32x64xbf16>, vector<2x64xf32> -> vector<2x64xf32>
    %36 = vector.extract_strided_slice %35 {offsets = [0, 0], sizes = [2, 32], strides = [1, 1]} : vector<2x64xf32> to vector<2x32xf32>
    %37 = vector.broadcast %13 : vector<1x32xf32> to vector<2x32xf32>
    %38 = arith.addf %36, %37 : vector<2x32xf32>
    %39 = arith.addf %38, %29 : vector<2x32xf32>
    %40 = math.tanh %39 : vector<2x32xf32>
    %41 = vector.extract_strided_slice %35 {offsets = [0, 32], sizes = [2, 32], strides = [1, 1]} : vector<2x64xf32> to vector<2x32xf32>
    %42 = arith.truncf %40 : vector<2x32xf32> to vector<2x32xbf16>
    %cst_15 = arith.constant dense<0.000000e+00> : vector<2x32xf32>
    %43 = tpu.matmul %42, %12, %cst_15 {dimension_numbers = #tpu.dot_dimension_numbers<[1], [0], [0], [1], [0, 0, 1, 1], [], []>} : vector<2x32xbf16>, vector<32x32xbf16>, vector<2x32xf32> -> vector<2x32xf32>
    %44 = vector.extract_strided_slice %10 {offsets = [2, 0, 0], sizes = [1, 2, 32], strides = [1, 1, 1]} : vector<8x2x32xf32> to vector<1x2x32xf32>
    %45 = vector.shape_cast %44 : vector<1x2x32xf32> to vector<2x32xf32>
    %46 = arith.addf %45, %41 : vector<2x32xf32>
    %47 = math.tanh %46 : vector<2x32xf32>
    %48 = arith.truncf %47 : vector<2x32xf32> to vector<2x32xbf16>
    %cst_16 = arith.constant dense<0.000000e+00> : vector<2x64xf32>
    %49 = tpu.matmul %48, %11, %cst_16 {dimension_numbers = #tpu.dot_dimension_numbers<[1], [0], [0], [1], [0, 0, 1, 1], [], []>} : vector<2x32xbf16>, vector<32x64xbf16>, vector<2x64xf32> -> vector<2x64xf32>
    %50 = vector.extract_strided_slice %49 {offsets = [0, 0], sizes = [2, 32], strides = [1, 1]} : vector<2x64xf32> to vector<2x32xf32>
    %51 = vector.broadcast %13 : vector<1x32xf32> to vector<2x32xf32>
    %52 = arith.addf %50, %51 : vector<2x32xf32>
    %53 = arith.addf %52, %43 : vector<2x32xf32>
    %54 = math.tanh %53 : vector<2x32xf32>
    %55 = vector.extract_strided_slice %49 {offsets = [0, 32], sizes = [2, 32], strides = [1, 1]} : vector<2x64xf32> to vector<2x32xf32>
    %56 = arith.truncf %54 : vector<2x32xf32> to vector<2x32xbf16>
    %cst_17 = arith.constant dense<0.000000e+00> : vector<2x32xf32>
    %57 = tpu.matmul %56, %12, %cst_17 {dimension_numbers = #tpu.dot_dimension_numbers<[1], [0], [0], [1], [0, 0, 1, 1], [], []>} : vector<2x32xbf16>, vector<32x32xbf16>, vector<2x32xf32> -> vector<2x32xf32>
    %58 = vector.extract_strided_slice %10 {offsets = [3, 0, 0], sizes = [1, 2, 32], strides = [1, 1, 1]} : vector<8x2x32xf32> to vector<1x2x32xf32>
    %59 = vector.shape_cast %58 : vector<1x2x32xf32> to vector<2x32xf32>
    %60 = arith.addf %59, %55 : vector<2x32xf32>
    %61 = math.tanh %60 : vector<2x32xf32>
    %62 = arith.truncf %61 : vector<2x32xf32> to vector<2x32xbf16>
    %cst_18 = arith.constant dense<0.000000e+00> : vector<2x64xf32>
    %63 = tpu.matmul %62, %11, %cst_18 {dimension_numbers = #tpu.dot_dimension_numbers<[1], [0], [0], [1], [0, 0, 1, 1], [], []>} : vector<2x32xbf16>, vector<32x64xbf16>, vector<2x64xf32> -> vector<2x64xf32>
    %64 = vector.extract_strided_slice %63 {offsets = [0, 0], sizes = [2, 32], strides = [1, 1]} : vector<2x64xf32> to vector<2x32xf32>
    %65 = vector.broadcast %13 : vector<1x32xf32> to vector<2x32xf32>
    %66 = arith.addf %64, %65 : vector<2x32xf32>
    %67 = arith.addf %66, %57 : vector<2x32xf32>
    %68 = math.tanh %67 : vector<2x32xf32>
    %69 = vector.extract_strided_slice %63 {offsets = [0, 32], sizes = [2, 32], strides = [1, 1]} : vector<2x64xf32> to vector<2x32xf32>
    %70 = arith.truncf %68 : vector<2x32xf32> to vector<2x32xbf16>
    %cst_19 = arith.constant dense<0.000000e+00> : vector<2x32xf32>
    %71 = tpu.matmul %70, %12, %cst_19 {dimension_numbers = #tpu.dot_dimension_numbers<[1], [0], [0], [1], [0, 0, 1, 1], [], []>} : vector<2x32xbf16>, vector<32x32xbf16>, vector<2x32xf32> -> vector<2x32xf32>
    %72 = vector.extract_strided_slice %10 {offsets = [4, 0, 0], sizes = [1, 2, 32], strides = [1, 1, 1]} : vector<8x2x32xf32> to vector<1x2x32xf32>
    %73 = vector.shape_cast %72 : vector<1x2x32xf32> to vector<2x32xf32>
    %74 = arith.addf %73, %69 : vector<2x32xf32>
    %75 = math.tanh %74 : vector<2x32xf32>
    %76 = arith.truncf %75 : vector<2x32xf32> to vector<2x32xbf16>
    %cst_20 = arith.constant dense<0.000000e+00> : vector<2x64xf32>
    %77 = tpu.matmul %76, %11, %cst_20 {dimension_numbers = #tpu.dot_dimension_numbers<[1], [0], [0], [1], [0, 0, 1, 1], [], []>} : vector<2x32xbf16>, vector<32x64xbf16>, vector<2x64xf32> -> vector<2x64xf32>
    %78 = vector.extract_strided_slice %77 {offsets = [0, 0], sizes = [2, 32], strides = [1, 1]} : vector<2x64xf32> to vector<2x32xf32>
    %79 = vector.broadcast %13 : vector<1x32xf32> to vector<2x32xf32>
    %80 = arith.addf %78, %79 : vector<2x32xf32>
    %81 = arith.addf %80, %71 : vector<2x32xf32>
    %82 = math.tanh %81 : vector<2x32xf32>
    %83 = vector.extract_strided_slice %77 {offsets = [0, 32], sizes = [2, 32], strides = [1, 1]} : vector<2x64xf32> to vector<2x32xf32>
    %84 = arith.truncf %82 : vector<2x32xf32> to vector<2x32xbf16>
    %cst_21 = arith.constant dense<0.000000e+00> : vector<2x32xf32>
    %85 = tpu.matmul %84, %12, %cst_21 {dimension_numbers = #tpu.dot_dimension_numbers<[1], [0], [0], [1], [0, 0, 1, 1], [], []>} : vector<2x32xbf16>, vector<32x32xbf16>, vector<2x32xf32> -> vector<2x32xf32>
    %86 = vector.extract_strided_slice %10 {offsets = [5, 0, 0], sizes = [1, 2, 32], strides = [1, 1, 1]} : vector<8x2x32xf32> to vector<1x2x32xf32>
    %87 = vector.shape_cast %86 : vector<1x2x32xf32> to vector<2x32xf32>
    %88 = arith.addf %87, %83 : vector<2x32xf32>
    %89 = math.tanh %88 : vector<2x32xf32>
    %90 = arith.truncf %89 : vector<2x32xf32> to vector<2x32xbf16>
    %cst_22 = arith.constant dense<0.000000e+00> : vector<2x64xf32>
    %91 = tpu.matmul %90, %11, %cst_22 {dimension_numbers = #tpu.dot_dimension_numbers<[1], [0], [0], [1], [0, 0, 1, 1], [], []>} : vector<2x32xbf16>, vector<32x64xbf16>, vector<2x64xf32> -> vector<2x64xf32>
    %92 = vector.extract_strided_slice %91 {offsets = [0, 0], sizes = [2, 32], strides = [1, 1]} : vector<2x64xf32> to vector<2x32xf32>
    %93 = vector.broadcast %13 : vector<1x32xf32> to vector<2x32xf32>
    %94 = arith.addf %92, %93 : vector<2x32xf32>
    %95 = arith.addf %94, %85 : vector<2x32xf32>
    %96 = math.tanh %95 : vector<2x32xf32>
    %97 = vector.extract_strided_slice %91 {offsets = [0, 32], sizes = [2, 32], strides = [1, 1]} : vector<2x64xf32> to vector<2x32xf32>
    %98 = arith.truncf %96 : vector<2x32xf32> to vector<2x32xbf16>
    %cst_23 = arith.constant dense<0.000000e+00> : vector<2x32xf32>
    %99 = tpu.matmul %98, %12, %cst_23 {dimension_numbers = #tpu.dot_dimension_numbers<[1], [0], [0], [1], [0, 0, 1, 1], [], []>} : vector<2x32xbf16>, vector<32x32xbf16>, vector<2x32xf32> -> vector<2x32xf32>
    %100 = vector.extract_strided_slice %10 {offsets = [6, 0, 0], sizes = [1, 2, 32], strides = [1, 1, 1]} : vector<8x2x32xf32> to vector<1x2x32xf32>
    %101 = vector.shape_cast %100 : vector<1x2x32xf32> to vector<2x32xf32>
    %102 = arith.addf %101, %97 : vector<2x32xf32>
    %103 = math.tanh %102 : vector<2x32xf32>
    %104 = arith.truncf %103 : vector<2x32xf32> to vector<2x32xbf16>
    %cst_24 = arith.constant dense<0.000000e+00> : vector<2x64xf32>
    %105 = tpu.matmul %104, %11, %cst_24 {dimension_numbers = #tpu.dot_dimension_numbers<[1], [0], [0], [1], [0, 0, 1, 1], [], []>} : vector<2x32xbf16>, vector<32x64xbf16>, vector<2x64xf32> -> vector<2x64xf32>
    %106 = vector.extract_strided_slice %105 {offsets = [0, 0], sizes = [2, 32], strides = [1, 1]} : vector<2x64xf32> to vector<2x32xf32>
    %107 = vector.broadcast %13 : vector<1x32xf32> to vector<2x32xf32>
    %108 = arith.addf %106, %107 : vector<2x32xf32>
    %109 = arith.addf %108, %99 : vector<2x32xf32>
    %110 = math.tanh %109 : vector<2x32xf32>
    %111 = vector.extract_strided_slice %105 {offsets = [0, 32], sizes = [2, 32], strides = [1, 1]} : vector<2x64xf32> to vector<2x32xf32>
    %112 = arith.truncf %110 : vector<2x32xf32> to vector<2x32xbf16>
    %cst_25 = arith.constant dense<0.000000e+00> : vector<2x32xf32>
    %113 = tpu.matmul %112, %12, %cst_25 {dimension_numbers = #tpu.dot_dimension_numbers<[1], [0], [0], [1], [0, 0, 1, 1], [], []>} : vector<2x32xbf16>, vector<32x32xbf16>, vector<2x32xf32> -> vector<2x32xf32>
    %114 = vector.extract_strided_slice %10 {offsets = [7, 0, 0], sizes = [1, 2, 32], strides = [1, 1, 1]} : vector<8x2x32xf32> to vector<1x2x32xf32>
    %115 = vector.shape_cast %114 : vector<1x2x32xf32> to vector<2x32xf32>
    %116 = arith.addf %115, %111 : vector<2x32xf32>
    %117 = math.tanh %116 : vector<2x32xf32>
    %118 = arith.truncf %117 : vector<2x32xf32> to vector<2x32xbf16>
    %cst_26 = arith.constant dense<0.000000e+00> : vector<2x64xf32>
    %119 = tpu.matmul %118, %11, %cst_26 {dimension_numbers = #tpu.dot_dimension_numbers<[1], [0], [0], [1], [0, 0, 1, 1], [], []>} : vector<2x32xbf16>, vector<32x64xbf16>, vector<2x64xf32> -> vector<2x64xf32>
    %120 = vector.extract_strided_slice %119 {offsets = [0, 0], sizes = [2, 32], strides = [1, 1]} : vector<2x64xf32> to vector<2x32xf32>
    %121 = vector.broadcast %13 : vector<1x32xf32> to vector<2x32xf32>
    %122 = arith.addf %120, %121 : vector<2x32xf32>
    %123 = arith.addf %122, %113 : vector<2x32xf32>
    %124 = math.tanh %123 : vector<2x32xf32>
    %c0_27 = arith.constant 0 : index
    %c0_28 = arith.constant 0 : index
    %125 = vector.load %arg6[%c0_27, %c0_28] : memref<1x32xf32, #tpu.memory_space<vmem>>, vector<1x32xf32>
    %126 = vector.broadcast %125 : vector<1x32xf32> to vector<2x32xf32>
    %127 = arith.mulf %124, %126 : vector<2x32xf32>
    %cst_29 = arith.constant dense<0.000000e+00> : vector<2xf32>
    %128 = vector.multi_reduction <add>, %127, %cst_29 [1] : vector<2x32xf32> to vector<2xf32>
    %129 = vector.shape_cast %128 : vector<2xf32> to vector<2x1xf32>
    %c0_30 = arith.constant 0 : index
    %c0_31 = arith.constant 0 : index
    %130 = vector.load %arg7[%c0_30, %c0_31] : memref<1x1xf32, #tpu.memory_space<vmem>>, vector<1x1xf32>
    %131 = vector.broadcast %130 : vector<1x1xf32> to vector<2x1xf32>
    %132 = arith.addf %129, %131 : vector<2x1xf32>
    %c0_32 = arith.constant 0 : index
    %c0_33 = arith.constant 0 : index
    %133 = vector.load %arg8[%c0_32, %c0_33] : memref<2x1xf32, #tpu.memory_space<vmem>>, vector<2x1xf32>
    tpu.vector_store %arg8[%c0_32, %c0_33], %132 {strides = array<i32>} : memref<2x1xf32, #tpu.memory_space<vmem>>, vector<2x1xf32>,
    return
  }
}

</mosaic_0001>

<bundles_post_ra>
// kernel: tpu_custom_call.1
= control target key start
LH: loop header
LB: loop body
LE: loop exit
PB: predicated region body
PF: predicated region fallthrough
CT: control target
= control target key end

     0   :  { %s1448_s0 = inlined_call_operand.vmem [shape: f32[8,2], index: 0, kind: input, shape index: {}]   ;;  %s1449_s1 = inlined_call_operand.vmem [shape: f32[1,32], index: 1, kind: input, shape index: {}]   ;;  %s1450_s2 = inlined_call_operand.vmem [shape: f32[1,32], index: 2, kind: input, shape index: {}]   ;;  %s1451_s3 = inlined_call_operand.vmem [shape: bf16[32,64], index: 3, kind: input, shape index: {}]   ;;  %s1452_s4 = inlined_call_operand.hbm [shape: bf16[32,32], index: 4, kind: input, shape index: {}]   ;;  %s1453_s5 = inlined_call_operand.vmem [shape: f32[1,32], index: 5, kind: input, shape index: {}]   ;;  %s1454_s6 = inlined_call_operand.vmem [shape: f32[1,32], index: 6, kind: input, shape index: {}]   ;;  %s1455_s7 = inlined_call_operand.<no memory space> [shape: f32[1,1], index: 7, kind: input, shape index: {}]   ;;  %s1456_s8 = inlined_call_operand.vmem [shape: f32[2,1], index: 8, kind: output, shape index: {}]  }
   0x1   :  { %v13_v0 = vstv %s1455_s7 }
   0x2   :  { %14 = vst [vmem:[#allocation2] sm:$0x1] %v13_v0 }
   0x3   :  { %15 = vsyncpa [#allocation4], 0  ;;  %s1188_s29 = smov [#allocation3]   ;;  %s1164_s11 = scalar_lea.hbm %s1452_s4, 256 }
   0x4   :  { %s29_s30 = sshll.u32 %s1188_s29, 4  ;;  %p1165_p0 = scmp.ne.s32.totalorder %s1452_s4, %s1164_s11  ;;  %s30_s30 = int_to_ptr.vmem [resolvable:$true] %s29_s30 }
   0x5   :  { %p1168_p1 = scmp.lt.u32.totalorder %s1164_s11, %s1452_s4 }
   0x7   :  { %p1170_p2 = pnand %p1168_p1, %p1165_p0 }
   0x9   :  { %1173 = shalt.err (!%p1170_p2)
}
   0xa   :  { %s1174_s7 = scalar_lea.vmem %s30_s30, 256  ;;  %p1179_p4 = scmp.lt.s32.totalorder %s30_s30, %s30_s30 }
   0xb   :  { %p1175_p3 = scmp.ne.s32.totalorder %s30_s30, %s1174_s7  ;;  %p1180_p5 = scmp.lt.s32.totalorder %s1174_s7, %s1174_s7 }
   0xd   :  { %p1181_p6 = por %p1180_p5, %p1179_p4 }
   0xf   :  { %p1182_p7 = pnand %p1181_p6, %p1175_p3 }
  0x11   :  { %1185 = shalt.err (!%p1182_p7)
}
  0x12   :  { %s1189_s16 = smov 64   ;;  %s1190_s17 = smov 4  }
  0x13   :  { %35 = dma.hbm_to_vmem [thread:$0]  %s1452_s4, 256, %s30_s30, [#allocation4], %s1189_s16, %s1189_s16, %s1190_s17  }
  0x14   :  { %1186 = dma.done.wait [#allocation4], 256  }
  0x15   :  { %1187 = vsyncadd [#allocation4], 4294967040  ;;  %v47_v1 = vlaneseq  ;;  %v1191_v4 = vmov 0.0   ;;  %v1262_v5 = vld [vmem:[%s1448_s0] sm:$0xff]  ;;  %v1274_v8 = vld [vmem:[%s1451_s3 + $0x8] sm:$0xff]   ;;  %vm1192_vm0 = vmmov 0  }
  0x16   :  { %997 = vmatprep.subr.bf16.mxu0 %v1191_v4  ;;  %1005 = vmatprep.subr.bf16.mxu1 %v1191_v4  ;;  %v1268_v7 = vld [vmem:[%s1451_s3] sm:$0xff]   ;;  %vm157_vm1 = vcmask 261120   ;;  %v1308_v19 = vld [vmem:[#allocation3 + $0x8] sm:$0xff]   ;;  %s1193_s27 = smov 96   ;;  %vm909_vm2 = vcmask 254976   ;;  %vm921_vm3 = vcmask 1024  }
  0x17   :  { %v1254_v2 = vshrl.u32 %v47_v1, 7  ;;  %998 = vmatpush3.bf16.msra.mxu0 %v1268_v7  ;;  %1001 = vmatprep.mubr.msk.bf16.mxu0 %vm1192_vm0, %v1191_v4  ;;  %v1288_v11 = vld [vmem:[%s1449_s1] ss:$0 sm:$0xff]  ;;  %v1304_v18 = vld [vmem:[#allocation3] sm:$0xff]  }
  0x18   :  { %999 = vmatprep.subr.bf16.mxu0 %v1191_v4  ;;  %1009 = vmatprep.mubr.msk.bf16.mxu1 %vm1192_vm0, %v1191_v4  ;;  %v1293_v12 = vld [vmem:[%s1450_s2] ss:$0 sm:$0xff] }
  0x19   :  { %v49_v3 = vsub.s32 0, %v1254_v2  ;;  %v56_v9 = vsub.s32 1, %v1254_v2  ;;  %1006 = vmatpush3.bf16.msra.mxu1 %v1304_v18  ;;  %v1315_v20 = vld [vmem:[%s1453_s5] ss:$0 sm:$0xff]  ;;  %v63_v28 = vsub.s32 2, %v1254_v2  ;;  %v70_v49 = vsub.s32 3, %v1254_v2 }
  0x1a   :  { %1007 = vmatprep.subr.bf16.mxu1 %v1191_v4 }
  0x1b   :  { %v50_v6 = vrot.slane %v1262_v5, %v49_v3  ;;  %1000 = vmatpush3.bf16.msra.mxu0 %v1274_v8  ;;  %v57_v10 = vrot.slane %v1262_v5, %v56_v9  ;;  %v64_v29 = vrot.slane %v1262_v5, %v63_v28  ;;  %v71_v51 = vrot.slane %v1262_v5, %v70_v49 }
  0x1c   :  { %1013 = vmatprep.subr.bf16.mxu0 %v1191_v4 }
  0x1d   :  { %52 = vbcast.lane.b32.xlu0 %v50_v6, 256  ;;  %1008 = vmatpush3.bf16.msra.mxu1 %v1308_v19 }
  0x1e   :  { %1021 = vmatprep.subr.bf16.mxu1 %v1191_v4 }
  0x21   :  { %59 = vbcast.lane.b32.xlu0 %v57_v10, 256 }
  0x8f   :  { %v53_v13 = vpop.permute.xlu0 %52 }
  0x90   :  { %v110_v14 = vmul.f32 %v1288_v11, %v53_v13  ;;  %v77_v13 = vsub.s32 4, %v1254_v2 }
  0x92   :  { %v125_v15 = vadd.f32 %v1293_v12, %v110_v14 }
  0x93   :  { %v60_v30 = vpop.permute.xlu0 %59 }
  0x94   :  { %1132 = vtanh.f32 %v125_v15  ;;  %v111_v31 = vmul.f32 %v1288_v11, %v60_v30  ;;  %v78_v15 = vrot.slane %v1262_v5, %v77_v13 }
  0x96   :  { %v126_v32 = vadd.f32 %v1293_v12, %v111_v31 }
  0x9e   :  { %v1133_v16 = vpop.eup %1132 }
  0x9f   :  { %v144_v17 = vpack.c.bf16 %v1133_v16, %v1133_v16 }
  0xa1   :  { %1002 = vmatmul.mubr.msk.bf16.vlgmr.msra.gmra.mrb[0].mxu0 %vm157_vm1, %v144_v17 }
  0xa2   :  { %1014 = vmatpush3.bf16.msra.mxu0 %v1268_v7  ;;  %1017 = vmatprep.mubr.msk.bf16.mxu0 %vm1192_vm0, %v1191_v4 }
  0xa3   :  { %1015 = vmatprep.subr.bf16.mxu0 %v1191_v4 }
  0xa6   :  { %1016 = vmatpush3.bf16.msra.mxu0 %v1274_v8 }
  0xa7   :  { %1029 = vmatprep.subr.bf16.mxu0 %v1191_v4 }
 0x174   :  { %v195_v21 = vpop.f32.mrb[0].mxu0 }
 0x175   :  { %v207_v22 = vadd.f32 %v1315_v20, %v195_v21  ;;  %267 = vrot.lane.b32.xlu1 %v195_v21, %s1193_s27  ;;  %v1003_v23 = vpop.f32.mrb[1].mxu0 }
 0x176   :  { %v198_v24 = vpop.f32.mrb[2].mxu0 }
 0x177   :  { %1134 = vtanh.f32 %v207_v22  ;;  %v1004_v25 = vpop.f32.mrb[3].mxu0 }
 0x179   :  { %66 = vbcast.lane.b32.xlu1 %v64_v29, 256 }
 0x17d   :  { %73 = vbcast.lane.b32.xlu1 %v71_v51, 256 }
 0x181   :  { %v1135_v26 = vpop.eup %1134  ;;  %80 = vbcast.lane.b32.xlu1 %v78_v15, 256 }
 0x182   :  { %v210_v27 = vpack.c.bf16 %v1135_v26, %v1135_v26 }
 0x184   :  { %1010 = vmatmul.mubr.msk.bf16.vlgmr.msra.gmra.mrb[0].mxu1 %vm157_vm1, %v210_v27 }
 0x185   :  { %1022 = vmatpush3.bf16.msra.mxu1 %v1304_v18  ;;  %1025 = vmatprep.mubr.msk.bf16.mxu1 %vm1192_vm0, %v1191_v4 }
 0x186   :  { %1023 = vmatprep.subr.bf16.mxu1 %v1191_v4 }
 0x189   :  { %1024 = vmatpush3.bf16.msra.mxu1 %v1308_v19 }
 0x18a   :  { %1037 = vmatprep.subr.bf16.mxu1 %v1191_v4 }
 0x1e7   :  { %v268_v33 = vpop.permute.xlu1 %267 }
 0x1e8   :  { %v270_v34 = vadd.f32 %v268_v33, %v126_v32 }
 0x1ea   :  { %1136 = vtanh.f32 %v270_v34 }
 0x1eb   :  { %v67_v50 = vpop.permute.xlu1 %66 }
 0x1ec   :  { %v112_v52 = vmul.f32 %v1288_v11, %v67_v50 }
 0x1ee   :  { %v127_v53 = vadd.f32 %v1293_v12, %v112_v52 }
 0x1ef   :  { %v74_v14 = vpop.permute.xlu1 %73 }
 0x1f0   :  { %v113_v16 = vmul.f32 %v1288_v11, %v74_v14 }
 0x1f2   :  { %v128_v17 = vadd.f32 %v1293_v12, %v113_v16 }
 0x1f4   :  { %v1137_v35 = vpop.eup %1136 }
 0x1f5   :  { %v272_v36 = vpack.c.bf16 %v1137_v35, %v1137_v35 }
 0x1f7   :  { %1018 = vmatmul.mubr.msk.bf16.vlgmr.msra.gmra.mrb[4].mxu0 %vm157_vm1, %v272_v36 }
 0x1f8   :  { %1030 = vmatpush3.bf16.msra.mxu0 %v1268_v7  ;;  %1033 = vmatprep.mubr.msk.bf16.mxu0 %vm1192_vm0, %v1191_v4 }
 0x1f9   :  { %1031 = vmatprep.subr.bf16.mxu0 %v1191_v4 }
 0x1fc   :  { %1032 = vmatpush3.bf16.msra.mxu0 %v1274_v8 }
 0x1fd   :  { %1045 = vmatprep.subr.bf16.mxu0 %v1191_v4 }
 0x257   :  { %v260_v37 = vpop.f32.mrb[0].mxu1 }
 0x258   :  { %v1011_v38 = vpop.f32.mrb[1].mxu1 }
 0x259   :  { %v263_v39 = vpop.f32.mrb[2].mxu1  ;;  %v81_v38 = vpop.permute.xlu1 %80 }
 0x25a   :  { %v1012_v40 = vpop.f32.mrb[3].mxu1 }
 0x25b   :  { %v114_v40 = vmul.f32 %v1288_v11, %v81_v38 }
 0x2ca   :  { %v310_v41 = vpop.f32.mrb[4].mxu0 }
 0x2cb   :  { %v316_v42 = vadd.f32 %v1315_v20, %v310_v41  ;;  %364 = vrot.lane.b32.xlu0 %v310_v41, %s1193_s27  ;;  %v1019_v43 = vpop.f32.mrb[5].mxu0  ;;  %v129_v41 = vadd.f32 %v1293_v12, %v114_v40 }
 0x2cc   :  { %v313_v44 = vpop.f32.mrb[6].mxu0 }
 0x2cd   :  { %v317_v45 = vadd.f32 %v316_v42, %v260_v37  ;;  %v1020_v46 = vpop.f32.mrb[7].mxu0  ;;  %v84_v37 = vsub.s32 5, %v1254_v2 }
 0x2cf   :  { %1138 = vtanh.f32 %v317_v45  ;;  %v85_v39 = vrot.slane %v1262_v5, %v84_v37 }
 0x2d1   :  { %87 = vbcast.lane.b32.xlu1 %v85_v39, 256 }
 0x2d9   :  { %v1139_v47 = vpop.eup %1138 }
 0x2da   :  { %v319_v48 = vpack.c.bf16 %v1139_v47, %v1139_v47 }
 0x2dc   :  { %1026 = vmatmul.mubr.msk.bf16.vlgmr.msra.gmra.mrb[4].mxu1 %vm157_vm1, %v319_v48 }
 0x2dd   :  { %1038 = vmatpush3.bf16.msra.mxu1 %v1304_v18  ;;  %1041 = vmatprep.mubr.msk.bf16.mxu1 %vm1192_vm0, %v1191_v4 }
 0x2de   :  { %1039 = vmatprep.subr.bf16.mxu1 %v1191_v4 }
 0x2e1   :  { %1040 = vmatpush3.bf16.msra.mxu1 %v1308_v19 }
 0x2e2   :  { %1053 = vmatprep.subr.bf16.mxu1 %v1191_v4 }
 0x33d   :  { %v365_v54 = vpop.permute.xlu0 %364 }
 0x33e   :  { %v367_v55 = vadd.f32 %v365_v54, %v127_v53 }
 0x340   :  { %1140 = vtanh.f32 %v367_v55 }
 0x34a   :  { %v1141_v56 = vpop.eup %1140 }
 0x34b   :  { %v369_v57 = vpack.c.bf16 %v1141_v56, %v1141_v56 }
 0x34d   :  { %1034 = vmatmul.mubr.msk.bf16.vlgmr.msra.gmra.mrb[8].mxu0 %vm157_vm1, %v369_v57 }
 0x34e   :  { %1046 = vmatpush3.bf16.msra.mxu0 %v1268_v7  ;;  %1049 = vmatprep.mubr.msk.bf16.mxu0 %vm1192_vm0, %v1191_v4 }
 0x34f   :  { %1047 = vmatprep.subr.bf16.mxu0 %v1191_v4 }
 0x352   :  { %1048 = vmatpush3.bf16.msra.mxu0 %v1274_v8 }
 0x353   :  { %1061 = vmatprep.subr.bf16.mxu0 %v1191_v4 }
 0x3af   :  { %v357_v58 = vpop.f32.mrb[4].mxu1 }
 0x3b0   :  { %v1027_v59 = vpop.f32.mrb[5].mxu1 }
 0x3b1   :  { %v360_v60 = vpop.f32.mrb[6].mxu1  ;;  %v88_v59 = vpop.permute.xlu1 %87 }
 0x3b2   :  { %v1028_v61 = vpop.f32.mrb[7].mxu1 }
 0x3b3   :  { %v115_v61 = vmul.f32 %v1288_v11, %v88_v59 }
 0x420   :  { %v407_v62 = vpop.f32.mrb[8].mxu0 }
 0x421   :  { %v413_v63 = vadd.f32 %v1315_v20, %v407_v62  ;;  %461 = vrot.lane.b32.xlu0 %v407_v62, %s1193_s27  ;;  %v1035_v0 = vpop.f32.mrb[9].mxu0  ;;  %v130_v62 = vadd.f32 %v1293_v12, %v115_v61 }
 0x422   :  { %v410_v1 = vpop.f32.mrb[10].mxu0 }
 0x423   :  { %v414_v3 = vadd.f32 %v413_v63, %v357_v58  ;;  %v1036_v6 = vpop.f32.mrb[11].mxu0  ;;  %v91_v58 = vsub.s32 6, %v1254_v2 }
 0x425   :  { %1142 = vtanh.f32 %v414_v3  ;;  %v92_v60 = vrot.slane %v1262_v5, %v91_v58 }
 0x427   :  { %94 = vbcast.lane.b32.xlu1 %v92_v60, 256 }
 0x42f   :  { %v1143_v9 = vpop.eup %1142 }
 0x430   :  { %v416_v10 = vpack.c.bf16 %v1143_v9, %v1143_v9 }
 0x432   :  { %1042 = vmatmul.mubr.msk.bf16.vlgmr.msra.gmra.mrb[8].mxu1 %vm157_vm1, %v416_v10 }
 0x433   :  { %1054 = vmatpush3.bf16.msra.mxu1 %v1304_v18  ;;  %1057 = vmatprep.mubr.msk.bf16.mxu1 %vm1192_vm0, %v1191_v4 }
 0x434   :  { %1055 = vmatprep.subr.bf16.mxu1 %v1191_v4 }
 0x437   :  { %1056 = vmatpush3.bf16.msra.mxu1 %v1308_v19 }
 0x438   :  { %1069 = vmatprep.subr.bf16.mxu1 %v1191_v4 }
 0x493   :  { %v462_v21 = vpop.permute.xlu0 %461 }
 0x494   :  { %v464_v22 = vadd.f32 %v462_v21, %v128_v17 }
 0x496   :  { %1144 = vtanh.f32 %v464_v22 }
 0x4a0   :  { %v1145_v23 = vpop.eup %1144 }
 0x4a1   :  { %v466_v24 = vpack.c.bf16 %v1145_v23, %v1145_v23 }
 0x4a3   :  { %1050 = vmatmul.mubr.msk.bf16.vlgmr.msra.gmra.mrb[12].mxu0 %vm157_vm1, %v466_v24 }
 0x4a4   :  { %1062 = vmatpush3.bf16.msra.mxu0 %v1268_v7  ;;  %1065 = vmatprep.mubr.msk.bf16.mxu0 %vm1192_vm0, %v1191_v4 }
 0x4a5   :  { %1063 = vmatprep.subr.bf16.mxu0 %v1191_v4 }
 0x4a8   :  { %1064 = vmatpush3.bf16.msra.mxu0 %v1274_v8 }
 0x4a9   :  { %1077 = vmatprep.subr.bf16.mxu0 %v1191_v4 }
 0x505   :  { %v454_v25 = vpop.f32.mrb[8].mxu1 }
 0x506   :  { %v1043_v26 = vpop.f32.mrb[9].mxu1 }
 0x507   :  { %v457_v27 = vpop.f32.mrb[10].mxu1  ;;  %v95_v26 = vpop.permute.xlu1 %94 }
 0x508   :  { %v1044_v28 = vpop.f32.mrb[11].mxu1 }
 0x509   :  { %v116_v28 = vmul.f32 %v1288_v11, %v95_v26 }
 0x576   :  { %v504_v29 = vpop.f32.mrb[12].mxu0 }
 0x577   :  { %v510_v30 = vadd.f32 %v1315_v20, %v504_v29  ;;  %558 = vrot.lane.b32.xlu0 %v504_v29, %s1193_s27  ;;  %v1051_v31 = vpop.f32.mrb[13].mxu0  ;;  %v131_v29 = vadd.f32 %v1293_v12, %v116_v28 }
 0x578   :  { %v507_v32 = vpop.f32.mrb[14].mxu0 }
 0x579   :  { %v511_v33 = vadd.f32 %v510_v30, %v454_v25  ;;  %v1052_v34 = vpop.f32.mrb[15].mxu0  ;;  %v98_v25 = vsub.s32 7, %v1254_v2 }
 0x57b   :  { %1146 = vtanh.f32 %v511_v33  ;;  %v99_v27 = vrot.slane %v1262_v5, %v98_v25 }
 0x57d   :  { %101 = vbcast.lane.b32.xlu1 %v99_v27, 256 }
 0x585   :  { %v1147_v35 = vpop.eup %1146 }
 0x586   :  { %v513_v36 = vpack.c.bf16 %v1147_v35, %v1147_v35 }
 0x588   :  { %1058 = vmatmul.mubr.msk.bf16.vlgmr.msra.gmra.mrb[12].mxu1 %vm157_vm1, %v513_v36 }
 0x589   :  { %1070 = vmatpush3.bf16.msra.mxu1 %v1304_v18  ;;  %1073 = vmatprep.mubr.msk.bf16.mxu1 %vm1192_vm0, %v1191_v4 }
 0x58a   :  { %1071 = vmatprep.subr.bf16.mxu1 %v1191_v4 }
 0x58d   :  { %1072 = vmatpush3.bf16.msra.mxu1 %v1308_v19 }
 0x58e   :  { %1085 = vmatprep.subr.bf16.mxu1 %v1191_v4 }
 0x5e9   :  { %v559_v42 = vpop.permute.xlu0 %558 }
 0x5ea   :  { %v561_v43 = vadd.f32 %v559_v42, %v129_v41 }
 0x5ec   :  { %1148 = vtanh.f32 %v561_v43 }
 0x5ef   :  { %v102_v42 = vpop.permute.xlu1 %101 }
 0x5f0   :  { %v117_v43 = vmul.f32 %v1288_v11, %v102_v42 }
 0x5f6   :  { %v1149_v44 = vpop.eup %1148 }
 0x5f7   :  { %v563_v45 = vpack.c.bf16 %v1149_v44, %v1149_v44  ;;  %v132_v44 = vadd.f32 %v1293_v12, %v117_v43 }
 0x5f9   :  { %1066 = vmatmul.mubr.msk.bf16.vlgmr.msra.gmra.mrb[16].mxu0 %vm157_vm1, %v563_v45 }
 0x5fa   :  { %1078 = vmatpush3.bf16.msra.mxu0 %v1268_v7  ;;  %1081 = vmatprep.mubr.msk.bf16.mxu0 %vm1192_vm0, %v1191_v4 }
 0x5fb   :  { %1079 = vmatprep.subr.bf16.mxu0 %v1191_v4 }
 0x5fe   :  { %1080 = vmatpush3.bf16.msra.mxu0 %v1274_v8 }
 0x5ff   :  { %1093 = vmatprep.subr.bf16.mxu0 %v1191_v4 }
 0x65b   :  { %v551_v46 = vpop.f32.mrb[12].mxu1 }
 0x65c   :  { %v1059_v47 = vpop.f32.mrb[13].mxu1 }
 0x65d   :  { %v554_v48 = vpop.f32.mrb[14].mxu1 }
 0x65e   :  { %v1060_v49 = vpop.f32.mrb[15].mxu1 }
 0x6cc   :  { %v601_v50 = vpop.f32.mrb[16].mxu0 }
 0x6cd   :  { %v607_v51 = vadd.f32 %v1315_v20, %v601_v50  ;;  %655 = vrot.lane.b32.xlu0 %v601_v50, %s1193_s27  ;;  %v1067_v52 = vpop.f32.mrb[17].mxu0 }
 0x6ce   :  { %v604_v53 = vpop.f32.mrb[18].mxu0 }
 0x6cf   :  { %v608_v54 = vadd.f32 %v607_v51, %v551_v46  ;;  %v1068_v55 = vpop.f32.mrb[19].mxu0  ;;  %v951_v53 = vld [vmem:[#allocation2] ss:$0 sm:$0xff] }
 0x6d1   :  { %1150 = vtanh.f32 %v608_v54 }
 0x6db   :  { %v1151_v56 = vpop.eup %1150 }
 0x6dc   :  { %v610_v57 = vpack.c.bf16 %v1151_v56, %v1151_v56 }
 0x6de   :  { %1074 = vmatmul.mubr.msk.bf16.vlgmr.msra.gmra.mrb[16].mxu1 %vm157_vm1, %v610_v57 }
 0x6df   :  { %1086 = vmatpush3.bf16.msra.mxu1 %v1304_v18  ;;  %1089 = vmatprep.mubr.msk.bf16.mxu1 %vm1192_vm0, %v1191_v4 }
 0x6e0   :  { %1087 = vmatprep.subr.bf16.mxu1 %v1191_v4 }
 0x6e3   :  { %1088 = vmatpush3.bf16.msra.mxu1 %v1308_v19 }
 0x6e4   :  { %1101 = vmatprep.subr.bf16.mxu1 %v1191_v4 }
 0x73f   :  { %v656_v63 = vpop.permute.xlu0 %655 }
 0x740   :  { %v658_v0 = vadd.f32 %v656_v63, %v130_v62 }
 0x742   :  { %1152 = vtanh.f32 %v658_v0 }
 0x74c   :  { %v1153_v1 = vpop.eup %1152 }
 0x74d   :  { %v660_v3 = vpack.c.bf16 %v1153_v1, %v1153_v1 }
 0x74f   :  { %1082 = vmatmul.mubr.msk.bf16.vlgmr.msra.gmra.mrb[20].mxu0 %vm157_vm1, %v660_v3 }
 0x750   :  { %1094 = vmatpush3.bf16.msra.mxu0 %v1268_v7  ;;  %1097 = vmatprep.mubr.msk.bf16.mxu0 %vm1192_vm0, %v1191_v4 }
 0x751   :  { %1095 = vmatprep.subr.bf16.mxu0 %v1191_v4 }
 0x754   :  { %1096 = vmatpush3.bf16.msra.mxu0 %v1274_v8 }
 0x7b1   :  { %v648_v6 = vpop.f32.mrb[16].mxu1 }
 0x7b2   :  { %v1075_v9 = vpop.f32.mrb[17].mxu1 }
 0x7b3   :  { %v651_v10 = vpop.f32.mrb[18].mxu1 }
 0x7b4   :  { %v1076_v13 = vpop.f32.mrb[19].mxu1 }
 0x822   :  { %v698_v14 = vpop.f32.mrb[20].mxu0 }
 0x823   :  { %v704_v15 = vadd.f32 %v1315_v20, %v698_v14  ;;  %752 = vrot.lane.b32.xlu0 %v698_v14, %s1193_s27  ;;  %v1083_v16 = vpop.f32.mrb[21].mxu0 }
 0x824   :  { %v701_v17 = vpop.f32.mrb[22].mxu0 }
 0x825   :  { %v705_v21 = vadd.f32 %v704_v15, %v648_v6  ;;  %v1084_v22 = vpop.f32.mrb[23].mxu0 }
 0x827   :  { %1154 = vtanh.f32 %v705_v21 }
 0x831   :  { %v1155_v23 = vpop.eup %1154 }
 0x832   :  { %v707_v24 = vpack.c.bf16 %v1155_v23, %v1155_v23 }
 0x834   :  { %1090 = vmatmul.mubr.msk.bf16.vlgmr.msra.gmra.mrb[20].mxu1 %vm157_vm1, %v707_v24 }
 0x835   :  { %1102 = vmatpush3.bf16.msra.mxu1 %v1304_v18  ;;  %1105 = vmatprep.mubr.msk.bf16.mxu1 %vm1192_vm0, %v1191_v4 }
 0x836   :  { %1103 = vmatprep.subr.bf16.mxu1 %v1191_v4 }
 0x839   :  { %1104 = vmatpush3.bf16.msra.mxu1 %v1308_v19 }
 0x83a   :  { %1109 = vmatprep.subr.bf16.mxu1 %v1191_v4 }
 0x895   :  { %v753_v18 = vpop.permute.xlu0 %752 }
 0x896   :  { %v755_v30 = vadd.f32 %v753_v18, %v131_v29 }
 0x898   :  { %1156 = vtanh.f32 %v755_v30 }
 0x8a2   :  { %v1157_v31 = vpop.eup %1156 }
 0x8a3   :  { %v757_v32 = vpack.c.bf16 %v1157_v31, %v1157_v31 }
 0x8a5   :  { %1098 = vmatmul.mubr.msk.bf16.vlgmr.msra.gmra.mrb[24].mxu0 %vm157_vm1, %v757_v32 }
 0x907   :  { %v745_v19 = vpop.f32.mrb[20].mxu1 }
 0x908   :  { %v1091_v33 = vpop.f32.mrb[21].mxu1 }
 0x909   :  { %v748_v34 = vpop.f32.mrb[22].mxu1 }
 0x90a   :  { %v1092_v35 = vpop.f32.mrb[23].mxu1 }
 0x978   :  { %v795_v2 = vpop.f32.mrb[24].mxu0 }
 0x979   :  { %v801_v36 = vadd.f32 %v1315_v20, %v795_v2  ;;  %849 = vrot.lane.b32.xlu0 %v795_v2, %s1193_s27  ;;  %v1099_v5 = vpop.f32.mrb[25].mxu0 }
 0x97a   :  { %v798_v37 = vpop.f32.mrb[26].mxu0 }
 0x97b   :  { %v802_v38 = vadd.f32 %v801_v36, %v745_v19  ;;  %v1100_v39 = vpop.f32.mrb[27].mxu0 }
 0x97d   :  { %1158 = vtanh.f32 %v802_v38 }
 0x987   :  { %v1159_v40 = vpop.eup %1158 }
 0x988   :  { %v804_v41 = vpack.c.bf16 %v1159_v40, %v1159_v40 }
 0x98a   :  { %1106 = vmatmul.mubr.msk.bf16.vlgmr.msra.gmra.mrb[24].mxu1 %vm157_vm1, %v804_v41 }
 0x98b   :  { %1110 = vmatpush3.bf16.msra.mxu1 %v1268_v7  ;;  %1113 = vmatprep.mubr.msk.bf16.mxu1 %vm1192_vm0, %v1191_v4 }
 0x98c   :  { %1111 = vmatprep.subr.bf16.mxu1 %v1191_v4 }
 0x98f   :  { %1112 = vmatpush3.bf16.msra.mxu1 %v1274_v8  ;;  %v950_v8 = vld [vmem:[%s1454_s6] ss:$0 sm:$0xff] }
 0x9eb   :  { %v850_v45 = vpop.permute.xlu0 %849 }
 0x9ec   :  { %v852_v46 = vadd.f32 %v850_v45, %v132_v44 }
 0x9ee   :  { %1160 = vtanh.f32 %v852_v46 }
 0x9f8   :  { %v1161_v47 = vpop.eup %1160 }
 0x9f9   :  { %v854_v48 = vpack.c.bf16 %v1161_v47, %v1161_v47 }
 0x9fb   :  { %1114 = vmatmul.mubr.msk.bf16.vlgmr.msra.gmra.mrb[24].mxu1 %vm157_vm1, %v854_v48 }
 0xace   :  { %v892_v7 = vpop.f32.mrb[24].mxu1 }
 0xacf   :  { %v898_v49 = vadd.f32 %v1315_v20, %v892_v7  ;;  %v1115_v50 = vpop.f32.mrb[25].mxu1 }
 0xad0   :  { %v895_v51 = vpop.f32.mrb[26].mxu1 }
 0xad1   :  { %1162 = vtanh.f32 %v898_v49  ;;  %v1116_v4 = vpop.f32.mrb[27].mxu1 }
 0xadb   :  { %v1163_v11 = vpop.eup %1162 }
 0xadc   :  { %v908_v12 = vmul.f32 %v1163_v11, %v950_v8 }
 0xade   :  { %v910_v52 = vsel %vm909_vm2, %v908_v12, 0.0 }
 0xadf   :  { %911 = vadd.xlane.f32.xlu1 %v910_v52 }
 0xb6c   :  { %v912_v54 = vpop.xlane.xlu1 %911 }
 0xb6d   :  { %v920_v55 = vadd.f32 %v951_v53, %v912_v54 }
 0xb6f   :  { %922 = vst.msk [vmem:[%s1456_s8] sm:$0x3] %vm921_vm3, %v920_v55 }
 0xb70   :  { %927 = vsyncpa [#allocation4], 1 }

</bundles_post_ra>
